<compile_context>
chip_gen: v7x
topology: tpu7x:2x2x1
jax: 0.10.0
libtpu: 0.0.40
codegen_flags: <defaults>
</compile_context>

<pallas_src>
import jax
import jax.numpy as jnp
from jax.experimental import pallas as pl
from jax.experimental.pallas import tpu as pltpu


def _round_up(x, m):
    return -(-x // m) * m


def _make_snapmix_tile_kernel(total_b, tile_b):
    """total_b / tile_b are static Python ints captured in the closure."""

    def kernel(out_ref, side_ref, partial_ref):
        # out_ref:     (TILE_B, C)   logits in native dtype (bf16 or f32)
        # side_ref:    (TILE_B, 4)   f32  [ya, yb, lam_a, lam_b] (labels exact)
        # partial_ref: (1, 8, 128)   f32  per-tile partial sum (broadcast-filled)
        logits_nat = out_ref[...]                         # native dtype
        logits = logits_nat.astype(jnp.float32)           # f32 for logsumexp
        tb, c = logits.shape

        # log-softmax denominator: max-shifted logsumexp over the class lanes.
        m = jnp.max(logits, axis=-1, keepdims=True)                       # (TB,1)
        lse = m + jnp.log(jnp.sum(jnp.exp(logits - m), axis=-1, keepdims=True))

        side = side_ref[...]                                              # (TB,4) f32
        ya = side[:, 0:1].astype(jnp.int32)                               # exact
        yb = side[:, 1:2].astype(jnp.int32)
        la = side[:, 2:3]                                                 # f32
        lb = side[:, 3:4]

        # Fused weighted one-hot gather, done in the native logits dtype so the
        # compare/select/add/mul chain uses packed bf16 VALU ops on v6e/v7x.
        # Only the lane reduction accumulates in f32.
        #   loss_a*la + loss_b*lb = lse*(la+lb) - (la*logit[ya] + lb*logit[yb])
        cls = jax.lax.broadcasted_iota(jnp.int32, (tb, c), 1)
        la_n = la.astype(logits_nat.dtype)
        lb_n = lb.astype(logits_nat.dtype)
        w = jnp.where(cls == ya, la_n, 0.0) + jnp.where(cls == yb, lb_n, 0.0)
        pick = jnp.sum(w * logits_nat, axis=-1, keepdims=True,
                       dtype=jnp.float32)                                 # (TB,1)

        combined = lse * (la + lb) - pick                                 # (TB,1) f32

        # Ragged last tile: rows past the true batch hold undefined data (the
        # DMA only copies valid rows), so mask with a select -- NaN/Inf in the
        # unselected branch does not propagate.
        row = (pl.program_id(0) * tile_b
               + jax.lax.broadcasted_iota(jnp.int32, (tb, 1), 0))
        combined = jnp.where(row < total_b, combined, 0.0)

        tile_sum = jnp.sum(combined)

        # Lane/sublane-dense store of the per-tile partial sum (unmasked vst).
        partial_ref[...] = jnp.full(partial_ref.shape, tile_sum, dtype=jnp.float32)

    return kernel


def snapmix_loss(outputs, ya, yb, lam_a, lam_b, *, tile_b=None,
                 vmem_limit_bytes=None):
    """outputs: [B, C] (any float dtype), ya/yb: int[B], lam_a/lam_b: f32[B] -> scalar f32."""
    B, C = outputs.shape
    itemsize = jnp.dtype(outputs.dtype).itemsize

    # Per-generation VMEM: bigger tiles on v5e/v6e (128 MiB), safe on v7x (64 MiB).
    try:
        vmem_cap = int(pltpu.get_tpu_info().vmem_capacity_bytes)
    except Exception:
        vmem_cap = 64 * 1024 * 1024          # conservative fallback (v7x-sized)
    if vmem_limit_bytes is None:
        vmem_limit_bytes = min(vmem_cap // 2, 100 * 1024 * 1024)

    if tile_b is None:
        # Size against the FULL working set: 2 double-buffered native-dtype
        # input buffers + ~6 concurrent (tile_b, C) f32 in-kernel temporaries
        # (f32 logits, shifted logits, exp, iota, weights, product).
        bytes_per_row = C * (2 * itemsize + 6 * 4)
        budget = int(0.6 * vmem_limit_bytes)
        tile_b = max(8, (budget // max(1, bytes_per_row)) // 8 * 8)
        # Keep >= 2 tiles when the batch allows it, so the 'parallel' batch
        # axis can be sharded across the two TensorCores on v7x.
        if B >= 16:
            tile_b = min(tile_b, _round_up(-(-B // 2), 8))
    tile_b = max(8, (int(tile_b) // 8) * 8)
    # Never a tile larger than the (8-rounded) batch.
    tile_b = min(tile_b, _round_up(B, 8))

    num_tiles = -(-B // tile_b)

    # Single packed side array: [ya, yb, lam_a, lam_b] as f32 (labels are small
    # integers, exactly representable) -> one small DMA per grid step.
    side = jnp.stack([ya.astype(jnp.float32),
                      yb.astype(jnp.float32),
                      lam_a.astype(jnp.float32),
                      lam_b.astype(jnp.float32)], axis=-1)               # (B, 4)

    partials = pl.pallas_call(
        _make_snapmix_tile_kernel(B, tile_b),
        out_shape=jax.ShapeDtypeStruct((num_tiles, 8, 128), jnp.float32),
        grid_spec=pltpu.PrefetchScalarGridSpec(
            num_scalar_prefetch=0,
            grid=(num_tiles,),
            in_specs=[
                pl.BlockSpec((tile_b, C), lambda i: (i, 0)),   # logits tile (native dtype)
                pl.BlockSpec((tile_b, 4), lambda i: (i, 0)),   # packed side inputs
            ],
            out_specs=pl.BlockSpec((1, 8, 128), lambda i: (i, 0, 0)),
        ),
        compiler_params=pltpu.CompilerParams(
            dimension_semantics=("parallel",),      # batch tiles are independent
            vmem_limit_bytes=int(vmem_limit_bytes),
        ),
    )(outputs, side)

    # Tiny final reduction (num_tiles scalars) stays in JAX so the grid axis can
    # remain 'parallel'.
    return jnp.sum(partials[:, 0, 0]) / jnp.float32(B)


def snapmix_loss_ref(outputs, ya, yb, lam_a, lam_b):
    """Pure-JAX reference: CrossEntropyLoss(reduction='none') + SnapMix mix."""
    logp = jax.nn.log_softmax(outputs.astype(jnp.float32), axis=-1)
    loss_a = -jnp.take_along_axis(logp, ya[:, None], axis=-1)[:, 0]
    loss_b = -jnp.take_along_axis(logp, yb[:, None], axis=-1)[:, 0]
    return jnp.mean(loss_a * lam_a.astype(jnp.float32)
                    + loss_b * lam_b.astype(jnp.float32))


if __name__ == "__main__":
    key = jax.random.PRNGKey(0)
    k1, k2, k3, k4 = jax.random.split(key, 4)

    # Small shapes consistent with the module: batch=8 logits over 16 classes.
    B, C = 8, 16
    outputs = jax.random.normal(k1, (B, C), dtype=jnp.float32)
    ya = jax.random.randint(k2, (B,), 0, C, dtype=jnp.int32)
    yb = jax.random.randint(k3, (B,), 0, C, dtype=jnp.int32)
    lam_a = jax.random.uniform(k4, (B,), dtype=jnp.float32)
    lam_b = 1.0 - lam_a

    loss = snapmix_loss(outputs, ya, yb, lam_a, lam_b)
    jax.block_until_ready(loss)
    ref = snapmix_loss_ref(outputs, ya, yb, lam_a, lam_b)
    assert jnp.allclose(loss, ref, atol=1e-5, rtol=1e-5), (loss, ref)

    # Ragged batch (37 % 8 != 0), f32 path -> exercises in-kernel row masking
    # with a tight tolerance (no wrapper-side padding anymore).
    B2, C2 = 37, 160
    k5, k6, k7, k8 = jax.random.split(jax.random.PRNGKey(1), 4)
    outputs2 = jax.random.normal(k5, (B2, C2), dtype=jnp.float32)
    ya2 = jax.random.randint(k6, (B2,), 0, C2, dtype=jnp.int32)
    yb2 = jax.random.randint(k7, (B2,), 0, C2, dtype=jnp.int32)
    lam2 = jax.random.uniform(k8, (B2,), dtype=jnp.float32)
    loss2 = snapmix_loss(outputs2, ya2, yb2, lam2, 1.0 - lam2)
    jax.block_until_ready(loss2)
    ref2 = snapmix_loss_ref(outputs2, ya2, yb2, lam2, 1.0 - lam2)
    assert jnp.allclose(loss2, ref2, atol=1e-5, rtol=1e-5), (loss2, ref2)

    # Native bf16 logits (no wrapper cast; bf16 pick path) -> looser tolerance
    # because the two picked products are rounded to bf16.
    outputs3 = outputs2.astype(jnp.bfloat16)
    loss3 = snapmix_loss(outputs3, ya2, yb2, lam2, 1.0 - lam2)
    jax.block_until_ready(loss3)
    ref3 = snapmix_loss_ref(outputs3, ya2, yb2, lam2, 1.0 - lam2)
    assert jnp.allclose(loss3, ref3, atol=2e-2, rtol=2e-3), (loss3, ref3)

    print("KERNEL_OK")
</pallas_src>

<mosaic_0001>
module attributes {stable_mosaic.version = 11 : i64} {
  func.func @kernel(%arg0: i32, %arg1: memref<8x16xf32, #tpu.memory_space<vmem>>, %arg2: memref<8x4xf32, #tpu.memory_space<vmem>>, %arg3: memref<1x8x128xf32, #tpu.memory_space<vmem>>) attributes {dimension_semantics = [#tpu.dimension_semantics<parallel>], iteration_bounds = array<i64: 1>, scalar_prefetch = 0 : i64, scratch_operands = 0 : i64, tpu.core_type = #tpu.core_type<tc>, window_params = [{transform_indices = @transform_0, window_bounds = array<i64: 8, 16>}, {transform_indices = @transform_1, window_bounds = array<i64: 8, 4>}, {transform_indices = @transform_2, window_bounds = array<i64: 1, 8, 128>}]} {
    %c0 = arith.constant 0 : index
    %c0_0 = arith.constant 0 : index
    %0 = vector.load %arg1[%c0, %c0_0] : memref<8x16xf32, #tpu.memory_space<vmem>>, vector<8x16xf32>
    %cst = arith.constant dense<0xFF800000> : vector<8xf32>
    %1 = vector.multi_reduction <maximumf>, %0, %cst [1] : vector<8x16xf32> to vector<8xf32>
    %2 = vector.shape_cast %1 : vector<8xf32> to vector<8x1xf32>
    %3 = vector.broadcast %2 : vector<8x1xf32> to vector<8x16xf32>
    %4 = arith.subf %0, %3 : vector<8x16xf32>
    %5 = math.exp %4 : vector<8x16xf32>
    %cst_1 = arith.constant dense<0.000000e+00> : vector<8xf32>
    %6 = vector.multi_reduction <add>, %5, %cst_1 [1] : vector<8x16xf32> to vector<8xf32>
    %7 = vector.shape_cast %6 : vector<8xf32> to vector<8x1xf32>
    %8 = math.log %7 : vector<8x1xf32>
    %9 = arith.addf %2, %8 : vector<8x1xf32>
    %c0_2 = arith.constant 0 : index
    %c0_3 = arith.constant 0 : index
    %10 = vector.load %arg2[%c0_2, %c0_3] : memref<8x4xf32, #tpu.memory_space<vmem>>, vector<8x4xf32>
    %11 = vector.extract_strided_slice %10 {offsets = [0, 0], sizes = [8, 1], strides = [1, 1]} : vector<8x4xf32> to vector<8x1xf32>
    %12 = arith.fptosi %11 : vector<8x1xf32> to vector<8x1xi32>
    %13 = vector.extract_strided_slice %10 {offsets = [0, 1], sizes = [8, 1], strides = [1, 1]} : vector<8x4xf32> to vector<8x1xf32>
    %14 = arith.fptosi %13 : vector<8x1xf32> to vector<8x1xi32>
    %15 = vector.extract_strided_slice %10 {offsets = [0, 2], sizes = [8, 1], strides = [1, 1]} : vector<8x4xf32> to vector<8x1xf32>
    %16 = vector.extract_strided_slice %10 {offsets = [0, 3], sizes = [8, 1], strides = [1, 1]} : vector<8x4xf32> to vector<8x1xf32>
    %17 = tpu.iota {dimensions = array<i32: 1>} : vector<8x16xi32>
    %18 = vector.broadcast %12 : vector<8x1xi32> to vector<8x16xi32>
    %19 = arith.cmpi eq, %17, %18 : vector<8x16xi32>
    %cst_4 = arith.constant 0.000000e+00 : f32
    %20 = vector.shape_cast %15 : vector<8x1xf32> to vector<8x1xf32>
    %21 = vector.broadcast %20 : vector<8x1xf32> to vector<8x16xf32>
    %22 = vector.broadcast %cst_4 : f32 to vector<8x16xf32>
    %23 = arith.select %19, %21, %22 : vector<8x16xi1>, vector<8x16xf32>
    %24 = vector.broadcast %14 : vector<8x1xi32> to vector<8x16xi32>
    %25 = arith.cmpi eq, %17, %24 : vector<8x16xi32>
    %cst_5 = arith.constant 0.000000e+00 : f32
    %26 = vector.shape_cast %16 : vector<8x1xf32> to vector<8x1xf32>
    %27 = vector.broadcast %26 : vector<8x1xf32> to vector<8x16xf32>
    %28 = vector.broadcast %cst_5 : f32 to vector<8x16xf32>
    %29 = arith.select %25, %27, %28 : vector<8x16xi1>, vector<8x16xf32>
    %30 = arith.addf %23, %29 : vector<8x16xf32>
    %31 = arith.mulf %30, %0 : vector<8x16xf32>
    %cst_6 = arith.constant dense<0.000000e+00> : vector<8xf32>
    %32 = vector.multi_reduction <add>, %31, %cst_6 [1] : vector<8x16xf32> to vector<8xf32>
    %33 = vector.shape_cast %32 : vector<8xf32> to vector<8x1xf32>
    %34 = arith.addf %15, %16 : vector<8x1xf32>
    %35 = arith.mulf %9, %34 : vector<8x1xf32>
    %36 = arith.subf %35, %33 : vector<8x1xf32>
    %c8_i32 = arith.constant 8 : i32
    %37 = arith.muli %arg0, %c8_i32 : i32
    %38 = tpu.iota {dimensions = array<i32: 0>} : vector<8x1xi32>
    %39 = vector.broadcast %37 : i32 to vector<8x1xi32>
    %40 = arith.addi %39, %38 : vector<8x1xi32>
    %c8_i32_7 = arith.constant 8 : i32
    %41 = vector.broadcast %c8_i32_7 : i32 to vector<8x1xi32>
    %42 = arith.cmpi slt, %40, %41 : vector<8x1xi32>
    %cst_8 = arith.constant 0.000000e+00 : f32
    %43 = vector.broadcast %cst_8 : f32 to vector<8x1xf32>
    %44 = arith.select %42, %36, %43 : vector<8x1xi1>, vector<8x1xf32>
    %45 = vector.shape_cast %44 : vector<8x1xf32> to vector<1x8x1xf32>
    %cst_9 = arith.constant dense<0.000000e+00> : vector<1xf32>
    %46 = vector.multi_reduction <add>, %45, %cst_9 [1, 2] : vector<1x8x1xf32> to vector<1xf32>
    %47 = vector.shape_cast %46 : vector<1xf32> to vector<1x1x1xf32>
    %48 = vector.extract %47[0, 0, 0] : f32 from vector<1x1x1xf32>
    %49 = vector.broadcast %48 : f32 to vector<1x8x128xf32>
    %c0_10 = arith.constant 0 : index
    %c0_11 = arith.constant 0 : index
    %c0_12 = arith.constant 0 : index
    %50 = vector.load %arg3[%c0_10, %c0_11, %c0_12] : memref<1x8x128xf32, #tpu.memory_space<vmem>>, vector<1x8x128xf32>
    tpu.vector_store %arg3[%c0_10, %c0_11, %c0_12], %49 {strides = array<i32>} : memref<1x8x128xf32, #tpu.memory_space<vmem>>, vector<1x8x128xf32>,
    return
  }
  func.func @transform_0(%arg0: i32) -> (i32, i32) {
    %c0_i32 = arith.constant 0 : i32
    %c0_i32_0 = arith.constant 0 : i32
    return %arg0, %c0_i32 : i32, i32
  }
  func.func @transform_1(%arg0: i32) -> (i32, i32) {
    %c0_i32 = arith.constant 0 : i32
    %c0_i32_0 = arith.constant 0 : i32
    return %arg0, %c0_i32 : i32, i32
  }
  func.func @transform_2(%arg0: i32) -> (i32, i32, i32) {
    %c0_i32 = arith.constant 0 : i32
    %c0_i32_0 = arith.constant 0 : i32
    %c0_i32_1 = arith.constant 0 : i32
    return %arg0, %c0_i32, %c0_i32_0 : i32, i32, i32
  }
}

</mosaic_0001>

<bundles_post_ra>
// kernel: tpu_custom_call.1
= control target key start
LH: loop header
LB: loop body
LE: loop exit
PB: predicated region body
PF: predicated region fallthrough
CT: control target
= control target key end

     0   :  { %vm13_vm0 = vcmask 130048   ;;  %v142_v3 = vmov 2   ;;  %v143_v5 = vmov 0   ;;  %s185_s0 = inlined_call_operand.vmem [shape: f32[8,16], index: 0, kind: input, shape index: {}]   ;;  %s186_s1 = inlined_call_operand.vmem [shape: f32[8,4], index: 1, kind: input, shape index: {}]   ;;  %s187_s2 = inlined_call_operand.hbm [shape: f32[1,8,128], index: 2, kind: output, shape index: {}]  }
   0x1   :  { %v12_v0 = vld [vmem:[%s185_s0] sm:$0xff]  ;;  %110 = vset.pattern.permute.xlu1 %v142_v3  ;;  %109 = vset.pattern.permute.xlu0 %v143_v5 }
   0x2   :  { %v26_v1 = vld [vmem:[%s186_s1] sm:$0xff]  ;;  %v14_v2 = vsel %vm13_vm0, %v12_v0, -inf }
   0x3   :  { %v98_v4 = vtrunc.f32 %v26_v1 }
   0x4   :  { %7 = vsyncpa [#allocation3], 0  ;;  %15 = vmax.xlane.f32.xlu0 %v14_v2  ;;  %36 = vperm.xlu1 %110, %v26_v1   ;;  %v144_v7 = vmov 1   ;;  %v145_v8 = vmov 3   ;;  %v28_v10 = vlaneseq  ;;  %s146_s0 = smov 127   ;;  %s147_s1 = smov 126  }
   0x5   :  { %v99_v6 = vcvt.f32.s32 %v98_v4  ;;  %vm71_vm3 = vcmask 7168   ;;  %s148_s13 = smov [#allocation2]  }
   0x6   :  { %v29_v14 = vand.u32 127, %v28_v10  ;;  %s90_s14 = sshll.u32 %s148_s13, 4  ;;  %s91_s14 = int_to_ptr.vmem [resolvable:$true] %s90_s14 }
   0x7   :  { %s118_s16 = scalar_lea.vmem %s91_s14, 128  ;;  %p123_p1 = scmp.lt.s32.totalorder %s91_s14, %s91_s14 }
   0x8   :  { %111 = vset.pattern.permute.xlu1 %v144_v7  ;;  %p119_p0 = scmp.ne.s32.totalorder %s91_s14, %s118_s16  ;;  %p124_p2 = scmp.lt.s32.totalorder %s118_s16, %s118_s16 }
   0x9   :  { %41 = vperm.xlu1 %111, %v99_v6  }
   0xa   :  { %p125_p3 = por %p124_p2, %p123_p1 }
   0xc   :  { %p126_p4 = pnand %p125_p3, %p119_p0 }
   0xd   :  { %112 = vset.pattern.permute.xlu1 %v145_v8 }
   0xe   :  { %45 = vperm.xlu1 %112, %v26_v1  }
  0x1a   :  { %31 = vperm.xlu0 %109, %v99_v6  }
  0x1e   :  { %113 = vset.pattern.permute.xlu0 %v145_v8 }
  0x83   :  { %v37_v9 = vpop.permute.xlu1 %36 }
  0x88   :  { %v42_v11 = vpop.permute.xlu1 %41 }
  0x89   :  { %vm43_vm1 = vcmp.eq.s32.totalorder %v29_v14, %v42_v11 }
  0x8d   :  { %v46_v16 = vpop.permute.xlu1 %45 }
  0x8e   :  { %v48_v18 = vsel %vm43_vm1, %v46_v16, 0.0 }
  0x91   :  { %v16_v12 = vpop.xlane.xlu0 %15 }
  0x92   :  { %v17_v13 = vsub.f32 %v12_v0, %v16_v12 }
  0x94   :  { %v18_v15 = vmul.f32 1.442695, %v17_v13 }
  0x96   :  { %114 = vpow2.f32 %v18_v15 }
  0x99   :  { %v32_v17 = vpop.permute.xlu0 %31 }
  0x9a   :  { %vm33_vm2 = vcmp.eq.s32.totalorder %v29_v14, %v32_v17 }
  0x9b   :  { %v39_v19 = vsel %vm33_vm2, %v37_v9, 0.0 }
  0x9c   :  { %v49_v20 = vadd.f32 %v48_v18, %v39_v19 }
  0x9e   :  { %v50_v21 = vmul.f32 %v49_v20, %v12_v0 }
  0xa0   :  { %v115_v22 = vpop.eup %114  ;;  %v51_v23 = vsel %vm13_vm0, %v50_v21, 0.0 }
  0xa1   :  { %v20_v24 = vsel %vm13_vm0, %v115_v22, 0.0  ;;  %52 = vadd.xlane.f32.xlu0 %v51_v23 }
  0xa2   :  { %21 = vadd.xlane.f32.xlu1 %v20_v24 }
  0xb3   :  { %54 = vrot.lane.b32.xlu1 %v26_v1, %s146_s0 }
 0x12e   :  { %v53_v32 = vpop.xlane.xlu0 %52 }
 0x12f   :  { %v22_v25 = vpop.xlane.xlu1 %21 }
 0x130   :  { %116 = vlog2.f32 %v22_v25 }
 0x133   :  { %v55_v26 = vpop.permute.xlu1 %54 }
 0x134   :  { %v57_v29 = vadd.f32 %v55_v26, %v26_v1 }
 0x13a   :  { %v117_v27 = vpop.eup %116 }
 0x13b   :  { %v24_v28 = vmul.f32 0.6931472, %v117_v27 }
 0x13d   :  { %v25_v30 = vadd.f32 %v24_v28, %v16_v12 }
 0x13f   :  { %v58_v31 = vmul.f32 %v57_v29, %v25_v30 }
 0x141   :  { %v59_v33 = vsub.f32 %v58_v31, %v53_v32 }
 0x143   :  { %68 = vrot.lane.b32.xlu1 %v59_v33, %s147_s1 }
 0x1b5   :  { %v69_v34 = vpop.permute.xlu1 %68 }
 0x1b6   :  { %v72_v35 = vsel %vm71_vm3, %v69_v34, 0.0 }
 0x1b7   :  { %73 = vadd.xlane.f32.xlu1 %v72_v35 }
 0x244   :  { %v74_v36 = vpop.xlane.xlu1 %73 }
 0x245   :  { %v75_v37 = vrot.slane %v74_v36, 4 }
 0x247   :  { %v76_v38 = vadd.f32 %v75_v37, %v74_v36 }
 0x249   :  { %v77_v39 = vrot.slane %v76_v38, 2 }
 0x24b   :  { %v78_v40 = vadd.f32 %v77_v39, %v76_v38 }
 0x24d   :  { %v79_v41 = vrot.slane %v78_v40, 1 }
 0x24f   :  { %v80_v42 = vadd.f32 %v79_v41, %v78_v40 }
 0x251   :  { %100 = vpush %v80_v42 }
 0x282   :  { %s101_s15 = spop %100 }
 0x283   :  { %v82_v43 = vstv %s101_s15 }
 0x284   :  { %83 = vst [vmem:[#allocation2] sm:$0xff] %v82_v43 }
 0x285   :  { %129 = shalt.err (!%p126_p4)
}
 0x286   :  { %s130_s19 = scalar_lea.hbm %s187_s2, 128 }
 0x287   :  { %p131_p5 = scmp.ne.s32.totalorder %s187_s2, %s130_s19  ;;  %p134_p6 = scmp.lt.u32.totalorder %s130_s19, %s187_s2 }
 0x289   :  { %p136_p7 = pnand %p134_p6, %p131_p5 }
 0x28b   :  { %139 = shalt.err (!%p136_p7)
}
 0x28c   :  { %93 = dma.vmem_to_hbm [thread:$0]  %s91_s14, 128, %s187_s2, [#allocation3]  }
 0x28d   :  { %140 = dma.done.wait [#allocation3], 128  }
 0x28e   :  { %141 = vsyncadd [#allocation3], 4294967168 }
 0x28f   :  { %97 = vsyncpa [#allocation3], 1 }

</bundles_post_ra>
